<compile_context>
chip_gen: v7x
topology: tpu7x:2x2x1
jax: 0.10.0
libtpu: 0.0.40
codegen_flags: <defaults>
</compile_context>

<pallas_src>
import functools

import jax
import jax.numpy as jnp
from jax.experimental import pallas as pl
from jax.experimental.pallas import tpu as pltpu

HIDDEN = 768
SENT_DIM = 5
LANES = 128
NEG_BIG = -1e30  # bias pad value: drives padded softmax lanes to exactly 0


def _round_up(x, m):
    return (x + m - 1) // m * m


def _pick_batch_tile(B, batch_tile, align, min_steps=4):
    """Pick (TB, Bp): TB % align == 0, TB | Bp, Bp >= B with minimal padding,
    preferring >= min_steps grid steps (pipelining / v7x megacore) and
    TB <= batch_tile (VMEM)."""
    Ba = _round_up(B, align)
    m = Ba // align
    divs = set()
    i = 1
    while i * i <= m:
        if m % i == 0:
            divs.add(i)
            divs.add(m // i)
        i += 1
    cand = [align * t for t in sorted(divs) if align * t <= batch_tile] or [align]
    want = min(min_steps, m)
    good = [tb for tb in cand if Ba // tb >= want]
    tb = max(good) if good else max(cand)
    return tb, _round_up(Ba, tb)


def _softmax_rows(x, approx):
    m = jnp.max(x, axis=1, keepdims=True)
    e = jnp.exp(x - m)
    return e * pl.reciprocal(jnp.sum(e, axis=1, keepdims=True), approx=approx)


def _agreement_head_kernel(pooled_ref, sent_ref, w1_ref, b1_ref,
                           w2a_ref, w2b_ref, b2_ref, out_ref, *, approx_recip):
    # fc_agreement_embedding + softmax (dropout is identity at inference).
    logits1 = jnp.dot(pooled_ref[...], w1_ref[...],
                      preferred_element_type=jnp.float32) + b1_ref[...]
    p1 = _softmax_rows(logits1, approx_recip)           # (TB, LP); pad lanes == 0

    # fc_agreement(concat([p1, sentiment], 1)) as two lane-dense matmuls
    # (w2 pre-split by concat order; avoids a cross-lane concatenate).
    logits2 = (jnp.dot(p1.astype(w2a_ref.dtype), w2a_ref[...],
                       preferred_element_type=jnp.float32)
               + jnp.dot(sent_ref[...], w2b_ref[...],
                         preferred_element_type=jnp.float32)
               + b2_ref[...])
    out_ref[...] = _softmax_rows(logits2, approx_recip).astype(out_ref.dtype)


def prepare_agreement_head_params(w1_t, b1, w2_t, b2, *, compute_dtype=jnp.float32):
    """One-time (model-load-time) weight padding / casting / splitting.

    w1_t: (768, L)   b1: (1, L)   w2_t: (L + S, L)   b2: (1, L)
    Invariant: padded weight rows/cols are exactly 0 and padded bias lanes are
    -1e30 so every padded softmax lane is exactly 0.
    """
    H, L = w1_t.shape
    S = w2_t.shape[0] - L
    LP = _round_up(L, LANES)
    SP = _round_up(max(S, 1), 8)
    cdt = jnp.dtype(compute_dtype)

    w1_p = jnp.zeros((H, LP), cdt).at[:, :L].set(w1_t.astype(cdt))
    b1_p = jnp.full((1, LP), NEG_BIG, jnp.float32).at[:, :L].set(
        b1.reshape(1, L).astype(jnp.float32))
    # Split w2 by the concat order [p1 (L rows), sentiment (S rows)].
    w2a_p = jnp.zeros((LP, LP), cdt).at[:L, :L].set(w2_t[:L].astype(cdt))
    w2b_p = jnp.zeros((SP, LP), jnp.float32).at[:S, :L].set(
        w2_t[L:].astype(jnp.float32))
    b2_p = jnp.full((1, LP), NEG_BIG, jnp.float32).at[:, :L].set(
        b2.reshape(1, L).astype(jnp.float32))

    return dict(w1=w1_p, b1=b1_p, w2a=w2a_p, w2b=w2b_p, b2=b2_p,
                L=L, S=S, H=H, LP=LP, SP=SP, compute_dtype=cdt)


def agreement_head(pooled, sentiment, params, *, out_dtype=jnp.float32,
                   batch_tile=512):
    """pooled: (B, 768), sentiment: (B, S). Returns softmax probs (B, L)."""
    B, H = pooled.shape
    L, S, LP, SP = params["L"], params["S"], params["LP"], params["SP"]
    cdt = params["compute_dtype"]
    odt = jnp.dtype(out_dtype)
    assert H == params["H"]
    assert sentiment.shape == (B, S)

    # Sub-32-bit operands/outputs want >= 16 sublanes per tile.
    align = 8 * max(4 // cdt.itemsize, 4 // odt.itemsize, 1)
    TB, Bp = _pick_batch_tile(B, batch_tile, align)
    grid = (Bp // TB,)

    # pooled dominates HBM traffic: zero-copy pass-through whenever possible.
    if Bp != B:
        pooled_in = jnp.zeros((Bp, H), cdt).at[:B].set(pooled.astype(cdt))
    elif pooled.dtype != cdt:
        # Prefer feeding pooled already in compute_dtype (e.g. bf16 BERT pooler)
        # to skip this cast pass entirely.
        pooled_in = pooled.astype(cdt)
    else:
        pooled_in = pooled

    # Sentiment is tiny: pad only to 8 lanes (and Bp rows).
    sent_p = jnp.zeros((Bp, SP), jnp.float32).at[:B, :S].set(
        sentiment.astype(jnp.float32))

    approx = bool(cdt == jnp.dtype(jnp.bfloat16))
    kernel = functools.partial(_agreement_head_kernel, approx_recip=approx)

    cost = pl.CostEstimate(
        flops=2 * Bp * H * LP + 2 * Bp * (LP + SP) * LP,
        transcendentals=2 * Bp * LP,
        bytes_accessed=(Bp * H * cdt.itemsize + Bp * SP * 4 + Bp * LP * odt.itemsize
                        + H * LP * cdt.itemsize + LP * LP * cdt.itemsize
                        + SP * LP * 4 + 2 * LP * 4),
    )

    out_p = pl.pallas_call(
        kernel,
        out_shape=jax.ShapeDtypeStruct((Bp, LP), odt),
        grid=grid,
        in_specs=[
            pl.BlockSpec((TB, H), lambda i: (i, 0)),    # pooled    (batch-tiled)
            pl.BlockSpec((TB, SP), lambda i: (i, 0)),   # sentiment (batch-tiled, 8 lanes)
            pl.BlockSpec((H, LP), lambda i: (0, 0)),    # w1   (VMEM resident)
            pl.BlockSpec((1, LP), lambda i: (0, 0)),    # b1
            pl.BlockSpec((LP, LP), lambda i: (0, 0)),   # w2a
            pl.BlockSpec((SP, LP), lambda i: (0, 0)),   # w2b
            pl.BlockSpec((1, LP), lambda i: (0, 0)),    # b2
        ],
        out_specs=pl.BlockSpec((TB, LP), lambda i: (i, 0)),
        compiler_params=pltpu.CompilerParams(
            dimension_semantics=("parallel",)),
        cost_estimate=cost,
    )(pooled_in, sent_p, params["w1"], params["b1"],
      params["w2a"], params["w2b"], params["b2"])

    # TODO(synk): a fused downstream consumer should read the padded (Bp, LP)
    #             buffer directly instead of paying this slice pass.
    return out_p[:B, :L]


def reference_head(pooled, sentiment, w1_t, b1, w2_t, b2):
    logits1 = pooled @ w1_t + b1
    p1 = jax.nn.softmax(logits1, axis=1)
    cat = jnp.concatenate([p1, sentiment], axis=1)
    logits2 = cat @ w2_t + b2
    return jax.nn.softmax(logits2, axis=1)


if __name__ == "__main__":
    L = 3            # labels_num

    key = jax.random.PRNGKey(0)
    k_pool, k_sent, k_w1, k_b1, k_w2, k_b2 = jax.random.split(key, 6)

    # nn.Linear-style deterministic parameter init.
    lim1 = 1.0 / jnp.sqrt(HIDDEN)
    w1_t = jax.random.uniform(k_w1, (HIDDEN, L), jnp.float32, -lim1, lim1)
    b1 = jax.random.uniform(k_b1, (1, L), jnp.float32, -lim1, lim1)
    lim2 = 1.0 / jnp.sqrt(SENT_DIM + L)
    w2_t = jax.random.uniform(k_w2, (L + SENT_DIM, L), jnp.float32, -lim2, lim2)
    b2 = jax.random.uniform(k_b2, (1, L), jnp.float32, -lim2, lim2)

    # BERT pooled output stand-in + sentiment features.
    B = 16
    pooled = jax.random.normal(k_pool, (B, HIDDEN), dtype=jnp.float32)
    sentiment = jax.random.normal(k_sent, (B, SENT_DIM), dtype=jnp.float32)
    ref = reference_head(pooled, sentiment, w1_t, b1, w2_t, b2)

    # --- f32 path, B multiple of 8: zero-copy pooled, 2 grid steps. ---
    params_f32 = prepare_agreement_head_params(
        w1_t, b1, w2_t, b2, compute_dtype=jnp.float32)
    out_f32 = jax.block_until_ready(
        agreement_head(pooled, sentiment, params_f32, out_dtype=jnp.float32))
    assert out_f32.shape == (B, L)
    assert jnp.allclose(out_f32, ref, atol=1e-5, rtol=1e-5), (out_f32, ref)

    # --- f32 path, B not 8-aligned: exercises the row-padding fallback. ---
    B2 = 2
    out_small = jax.block_until_ready(
        agreement_head(pooled[:B2], sentiment[:B2], params_f32,
                       out_dtype=jnp.float32))
    assert out_small.shape == (B2, L)
    assert jnp.allclose(out_small, ref[:B2], atol=1e-5, rtol=1e-5)

    # --- bf16 operand / bf16 output path (pooled already in bf16, as from a
    #     bf16 BERT pooler -> no wrapper cast pass). f32 MXU accumulation and
    #     f32 softmax keep it close to the f32 reference. ---
    params_bf16 = prepare_agreement_head_params(
        w1_t, b1, w2_t, b2, compute_dtype=jnp.bfloat16)
    out_bf16 = jax.block_until_ready(
        agreement_head(pooled.astype(jnp.bfloat16), sentiment, params_bf16,
                       out_dtype=jnp.bfloat16))
    assert out_bf16.shape == (B, L)
    assert jnp.allclose(out_bf16.astype(jnp.float32), ref, atol=2e-2, rtol=2e-2)

    print("KERNEL_OK")
</pallas_src>

<mosaic_0001>
module attributes {stable_mosaic.version = 11 : i64} {
  func.func @_agreement_head_kernel(%arg0: i32, %arg1: memref<8x768xf32, #tpu.memory_space<vmem>>, %arg2: memref<8x8xf32, #tpu.memory_space<vmem>>, %arg3: memref<768x128xf32, #tpu.memory_space<vmem>>, %arg4: memref<1x128xf32, #tpu.memory_space<vmem>>, %arg5: memref<128x128xf32, #tpu.memory_space<vmem>>, %arg6: memref<8x128xf32, #tpu.memory_space<vmem>>, %arg7: memref<1x128xf32, #tpu.memory_space<vmem>>, %arg8: memref<8x128xf32, #tpu.memory_space<vmem>>) attributes {dimension_semantics = [#tpu.dimension_semantics<parallel>], iteration_bounds = array<i64: 2>, scalar_prefetch = 0 : i64, scratch_operands = 0 : i64, tpu.core_type = #tpu.core_type<tc>, window_params = [{transform_indices = @transform_0, window_bounds = array<i64: 8, 768>}, {transform_indices = @transform_1, window_bounds = array<i64: 8, 8>}, {pipeline_mode = #tpu.pipeline_mode<synchronous>, transform_indices = @transform_2, window_bounds = array<i64: 768, 128>}, {pipeline_mode = #tpu.pipeline_mode<synchronous>, transform_indices = @transform_3, window_bounds = array<i64: 1, 128>}, {pipeline_mode = #tpu.pipeline_mode<synchronous>, transform_indices = @transform_4, window_bounds = array<i64: 128, 128>}, {pipeline_mode = #tpu.pipeline_mode<synchronous>, transform_indices = @transform_5, window_bounds = array<i64: 8, 128>}, {pipeline_mode = #tpu.pipeline_mode<synchronous>, transform_indices = @transform_6, window_bounds = array<i64: 1, 128>}, {transform_indices = @transform_7, window_bounds = array<i64: 8, 128>}]} {
    %c0 = arith.constant 0 : index
    %c0_0 = arith.constant 0 : index
    %0 = vector.load %arg1[%c0, %c0_0] : memref<8x768xf32, #tpu.memory_space<vmem>>, vector<8x768xf32>
    %c0_1 = arith.constant 0 : index
    %c0_2 = arith.constant 0 : index
    %1 = vector.load %arg3[%c0_1, %c0_2] : memref<768x128xf32, #tpu.memory_space<vmem>>, vector<768x128xf32>
    %cst = arith.constant dense<0.000000e+00> : vector<8x128xf32>
    %2 = tpu.matmul %0, %1, %cst {dimension_numbers = #tpu.dot_dimension_numbers<[1], [0], [0], [1], [0, 0, 1, 1], [], []>} : vector<8x768xf32>, vector<768x128xf32>, vector<8x128xf32> -> vector<8x128xf32>
    %c0_3 = arith.constant 0 : index
    %c0_4 = arith.constant 0 : index
    %3 = vector.load %arg4[%c0_3, %c0_4] : memref<1x128xf32, #tpu.memory_space<vmem>>, vector<1x128xf32>
    %4 = vector.broadcast %3 : vector<1x128xf32> to vector<8x128xf32>
    %5 = arith.addf %2, %4 : vector<8x128xf32>
    %cst_5 = arith.constant dense<0xFF800000> : vector<8xf32>
    %6 = vector.multi_reduction <maximumf>, %5, %cst_5 [1] : vector<8x128xf32> to vector<8xf32>
    %7 = vector.shape_cast %6 : vector<8xf32> to vector<8x1xf32>
    %8 = vector.broadcast %7 : vector<8x1xf32> to vector<8x128xf32>
    %9 = arith.subf %5, %8 : vector<8x128xf32>
    %10 = math.exp %9 : vector<8x128xf32>
    %cst_6 = arith.constant dense<0.000000e+00> : vector<8xf32>
    %11 = vector.multi_reduction <add>, %10, %cst_6 [1] : vector<8x128xf32> to vector<8xf32>
    %12 = vector.shape_cast %11 : vector<8xf32> to vector<8x1xf32>
    %13 = tpu.reciprocal %12 : vector<8x1xf32> -> vector<8x1xf32>
    %14 = vector.broadcast %13 : vector<8x1xf32> to vector<8x128xf32>
    %15 = arith.mulf %10, %14 : vector<8x128xf32>
    %c0_7 = arith.constant 0 : index
    %c0_8 = arith.constant 0 : index
    %16 = vector.load %arg5[%c0_7, %c0_8] : memref<128x128xf32, #tpu.memory_space<vmem>>, vector<128x128xf32>
    %cst_9 = arith.constant dense<0.000000e+00> : vector<8x128xf32>
    %17 = tpu.matmul %15, %16, %cst_9 {dimension_numbers = #tpu.dot_dimension_numbers<[1], [0], [0], [1], [0, 0, 1, 1], [], []>} : vector<8x128xf32>, vector<128x128xf32>, vector<8x128xf32> -> vector<8x128xf32>
    %c0_10 = arith.constant 0 : index
    %c0_11 = arith.constant 0 : index
    %18 = vector.load %arg2[%c0_10, %c0_11] : memref<8x8xf32, #tpu.memory_space<vmem>>, vector<8x8xf32>
    %c0_12 = arith.constant 0 : index
    %c0_13 = arith.constant 0 : index
    %19 = vector.load %arg6[%c0_12, %c0_13] : memref<8x128xf32, #tpu.memory_space<vmem>>, vector<8x128xf32>
    %cst_14 = arith.constant dense<0.000000e+00> : vector<8x128xf32>
    %20 = tpu.matmul %18, %19, %cst_14 {dimension_numbers = #tpu.dot_dimension_numbers<[1], [0], [0], [1], [0, 0, 1, 1], [], []>} : vector<8x8xf32>, vector<8x128xf32>, vector<8x128xf32> -> vector<8x128xf32>
    %21 = arith.addf %17, %20 : vector<8x128xf32>
    %c0_15 = arith.constant 0 : index
    %c0_16 = arith.constant 0 : index
    %22 = vector.load %arg7[%c0_15, %c0_16] : memref<1x128xf32, #tpu.memory_space<vmem>>, vector<1x128xf32>
    %23 = vector.broadcast %22 : vector<1x128xf32> to vector<8x128xf32>
    %24 = arith.addf %21, %23 : vector<8x128xf32>
    %cst_17 = arith.constant dense<0xFF800000> : vector<8xf32>
    %25 = vector.multi_reduction <maximumf>, %24, %cst_17 [1] : vector<8x128xf32> to vector<8xf32>
    %26 = vector.shape_cast %25 : vector<8xf32> to vector<8x1xf32>
    %27 = vector.broadcast %26 : vector<8x1xf32> to vector<8x128xf32>
    %28 = arith.subf %24, %27 : vector<8x128xf32>
    %29 = math.exp %28 : vector<8x128xf32>
    %cst_18 = arith.constant dense<0.000000e+00> : vector<8xf32>
    %30 = vector.multi_reduction <add>, %29, %cst_18 [1] : vector<8x128xf32> to vector<8xf32>
    %31 = vector.shape_cast %30 : vector<8xf32> to vector<8x1xf32>
    %32 = tpu.reciprocal %31 : vector<8x1xf32> -> vector<8x1xf32>
    %33 = vector.broadcast %32 : vector<8x1xf32> to vector<8x128xf32>
    %34 = arith.mulf %29, %33 : vector<8x128xf32>
    %c0_19 = arith.constant 0 : index
    %c0_20 = arith.constant 0 : index
    %35 = vector.load %arg8[%c0_19, %c0_20] : memref<8x128xf32, #tpu.memory_space<vmem>>, vector<8x128xf32>
    tpu.vector_store %arg8[%c0_19, %c0_20], %34 {strides = array<i32>} : memref<8x128xf32, #tpu.memory_space<vmem>>, vector<8x128xf32>,
    return
  }
  func.func @transform_0(%arg0: i32) -> (i32, i32) {
    %c0_i32 = arith.constant 0 : i32
    %c0_i32_0 = arith.constant 0 : i32
    return %arg0, %c0_i32 : i32, i32
  }
  func.func @transform_1(%arg0: i32) -> (i32, i32) {
    %c0_i32 = arith.constant 0 : i32
    %c0_i32_0 = arith.constant 0 : i32
    return %arg0, %c0_i32 : i32, i32
  }
  func.func @transform_2(%arg0: i32) -> (i32, i32) {
    %c0_i32 = arith.constant 0 : i32
    %c0_i32_0 = arith.constant 0 : i32
    %c0_i32_1 = arith.constant 0 : i32
    return %c0_i32, %c0_i32_0 : i32, i32
  }
  func.func @transform_3(%arg0: i32) -> (i32, i32) {
    %c0_i32 = arith.constant 0 : i32
    %c0_i32_0 = arith.constant 0 : i32
    %c0_i32_1 = arith.constant 0 : i32
    return %c0_i32, %c0_i32_0 : i32, i32
  }
  func.func @transform_4(%arg0: i32) -> (i32, i32) {
    %c0_i32 = arith.constant 0 : i32
    %c0_i32_0 = arith.constant 0 : i32
    %c0_i32_1 = arith.constant 0 : i32
    return %c0_i32, %c0_i32_0 : i32, i32
  }
  func.func @transform_5(%arg0: i32) -> (i32, i32) {
    %c0_i32 = arith.constant 0 : i32
    %c0_i32_0 = arith.constant 0 : i32
    %c0_i32_1 = arith.constant 0 : i32
    return %c0_i32, %c0_i32_0 : i32, i32
  }
  func.func @transform_6(%arg0: i32) -> (i32, i32) {
    %c0_i32 = arith.constant 0 : i32
    %c0_i32_0 = arith.constant 0 : i32
    %c0_i32_1 = arith.constant 0 : i32
    return %c0_i32, %c0_i32_0 : i32, i32
  }
  func.func @transform_7(%arg0: i32) -> (i32, i32) {
    %c0_i32 = arith.constant 0 : i32
    %c0_i32_0 = arith.constant 0 : i32
    return %arg0, %c0_i32 : i32, i32
  }
}

</mosaic_0001>

<bundles_post_ra>
// kernel: tpu_custom_call.1
= control target key start
LH: loop header
LB: loop body
LE: loop exit
PB: predicated region body
PF: predicated region fallthrough
CT: control target
= control target key end

     0   :  { %s1810_s0 = inlined_call_operand.hbm [shape: f32[16,768], index: 0, kind: input, shape index: {}]   ;;  %s1811_s1 = inlined_call_operand.vmem [shape: f32[16,8], index: 1, kind: input, shape index: {}]   ;;  %s1812_s2 = inlined_call_operand.hbm [shape: f32[768,128], index: 2, kind: input, shape index: {}]   ;;  %s1813_s3 = inlined_call_operand.vmem [shape: f32[1,128], index: 3, kind: input, shape index: {}]   ;;  %s1814_s4 = inlined_call_operand.hbm [shape: f32[128,128], index: 4, kind: input, shape index: {}]   ;;  %s1815_s5 = inlined_call_operand.vmem [shape: f32[8,128], index: 5, kind: input, shape index: {}]   ;;  %s1816_s6 = inlined_call_operand.vmem [shape: f32[1,128], index: 6, kind: input, shape index: {}]   ;;  %s1817_s7 = inlined_call_operand.hbm [shape: f32[16,128], index: 7, kind: output, shape index: {}]  }
   0x1   :  { %1821 = sst [smem:[#allocation12_spill]] %s1812_s2 }
   0x2   :  { %12 = vsyncpa [#allocation3], 0 }
   0x3   :  { %14 = vsyncpa [#allocation3 + $0x1], 0 }
   0x4   :  { %15 = vsyncpa [#allocation6], 0 }
   0x5   :  { %16 = vsyncpa [#allocation4], 0 }
   0x6   :  { %18 = vsyncpa [#allocation4 + $0x1], 0  ;;  %s1556_s24 = smov 0   ;;  %s1558_s25 = smov 0  }
   0x7   :  { %s1560_s26 = smov 0   ;;  %s1562_s27 = smov 0  }
   0x8 LB: > { %s1577_s28 = sadd.s32 4294967295, %s1505_s27   ;;  %s964_s29 = sadd.s32 4294967294, %s1505_s27   ;;  %s1505_s27 = sphi %s1562_s27, %s1839_s27   ;;  %s1501_s26 = sphi %s1560_s26, %s1838_s26   ;;  %s1497_s25 = sphi %s1558_s25, %s1837_s25   ;;  %s1493_s24 = sphi %s1556_s24, %s1836_s24  }
   0x9   : > { %p44_p0 = scmp.ne.s32.totalorder %s1497_s25, %s1493_s24  ;;  %p1818_p1 = scmp.eq.s32.totalorder %s1577_s28, 0 }
   0xa   : > { %p205_p3 = scmp.eq.s32.totalorder %s964_s29, 1  ;;  %p965_p5 = scmp.ge.s32.totalorder %s1505_s27, 1 }
   0xb   : > { %p1586_p4 = por %p1818_p1, %p44_p0  ;;  %p212_p7 = scmp.lt.s32.totalorder %s1505_s27, 3 }
   0xc   : > { %p1591_p6 = por %p205_p3, %p44_p0  ;;  %s1507_s10 = smov [#allocation5]  }
   0xd   : > { %s1822_s30 = scalar_select %p1586_p4, 1, 0 }
   0xe   : > { %s1823_s8 = scalar_select %p1591_p6, 1, 0 }
   0xf   : > { %p1596_p8 = pnand %p965_p5, %p212_p7  ;;  %s224_s11 = sshll.u32 %s1507_s10, 4  ;;  %s1600_s11 = int_to_ptr.vmem [resolvable:$true] %s224_s11 }
  0x10   : > { %s1508_s13 = smov [#allocation7]   ;;  %s1826_s2 = sld [smem:[#allocation12_spill]] }
  0x11   : > { %p1281_p9 = pneg %p1596_p8  ;;  %s240_s14 = sshll.u32 %s1508_s13, 4  ;;  %s1611_s14 = int_to_ptr.vmem [resolvable:$true] %s240_s14 }
  0x13   : > { %p1607_p11 = pnand %p1281_p9, %p1818_p1 }
  0x15   : > { %p1351_p13 = pneg %p1607_p11 }
  0x16   : > { %s1349_s17 = scalar_lea.hbm %s1826_s2, 12288 }
  0x17   : > { %p1350_p12 = scmp.ne.s32.totalorder %s1826_s2, %s1349_s17  ;;  %p1356_p5 = scmp.lt.u32.totalorder %s1349_s17, %s1826_s2 }
  0x19   : > { %p1352_p0 = pnand %p1351_p13, %p1350_p12 }
  0x1b   : > { %p1353_p3 = pneg %p1352_p0 }
  0x1d   : > { %p1358_p7 = pnand %p1356_p5, %p1353_p3 }
  0x1f   : > { %1361 = shalt.err (!%p1358_p7)
}
  0x20   : > { %s1362_s22 = scalar_lea.vmem %s1600_s11, 12288  ;;  %p1370_p2 = scmp.lt.s32.totalorder %s1600_s11, %s1600_s11 }
  0x21   : > { %p1363_p9 = scmp.ne.s32.totalorder %s1600_s11, %s1362_s22  ;;  %p1371_p12 = scmp.lt.s32.totalorder %s1362_s22, %s1362_s22 }
  0x23   : > { %p1365_p10 = pnand %p1363_p9, %p1351_p13  ;;  %p1372_p0 = por %p1371_p12, %p1370_p2 }
  0x25   : > { %p1366_p1 = pneg %p1365_p10 }
  0x27   : > { %p1373_p6 = pnand %p1372_p0, %p1366_p1 }
  0x29   : > { %1376 = shalt.err (!%p1373_p6)
}
  0x2a   : > { %s1509_s23 = smov 128   ;;  %s1510_s29 = smov 8  }
  0x2b   : > { %1284 = dma.hbm_to_vmem [thread:$0]  (!%p1607_p11), %s1826_s2, 12288, %s1600_s11, [#allocation6], %s1509_s23, %s1509_s23, %s1510_s29  }
  0x2c   : > { %s1377_s17 = scalar_lea.hbm %s1814_s4, 2048 }
  0x2d   : > { %p1378_p2 = scmp.ne.s32.totalorder %s1814_s4, %s1377_s17  ;;  %p1384_p10 = scmp.lt.u32.totalorder %s1377_s17, %s1814_s4 }
  0x2f   : > { %p1380_p1 = pnand %p1378_p2, %p1351_p13 }
  0x31   : > { %p1381_p6 = pneg %p1380_p1 }
  0x33   : > { %p1386_p3 = pnand %p1384_p10, %p1381_p6 }
  0x35   : > { %1389 = shalt.err (!%p1386_p3)
}
  0x36   : > { %s1390_s11 = scalar_lea.vmem %s1611_s14, 2048  ;;  %p1398_p12 = scmp.lt.s32.totalorder %s1611_s14, %s1611_s14 }
  0x37   : > { %p1391_p5 = scmp.ne.s32.totalorder %s1611_s14, %s1390_s11  ;;  %p1399_p0 = scmp.lt.s32.totalorder %s1390_s11, %s1390_s11 }
  0x39   : > { %p1393_p7 = pnand %p1391_p5, %p1351_p13  ;;  %p1400_p2 = por %p1399_p0, %p1398_p12 }
  0x3b   : > { %p1394_p9 = pneg %p1393_p7 }
  0x3d   : > { %p1401_p1 = pnand %p1400_p2, %p1394_p9 }
  0x3f   : > { %1404 = shalt.err (!%p1401_p1)
}
  0x40   : > { %1287 = dma.hbm_to_vmem [thread:$0]  (!%p1607_p11), %s1814_s4, 2048, %s1611_s14, [#allocation6], %s1509_s23, %s1509_s23, %s1510_s29  }
  0x41   : > { %s1666_s13 = sadd.s32 1, %s1505_s27   ;;  %s31_s12 = sadd.s32 1, %s1501_s26 }
  0x42   : > { %s28_s15 = ssub.s32 %s1505_s27, %s1666_s13  ;;  %p38_p13 = scmp.ne.s32.totalorder %s1501_s26, %s1497_s25 }
  0x43   : > { %p29_p6 = scmp.eq.s32.totalorder %s28_s15, 0  ;;  %p39_p10 = scmp.eq.s32.totalorder %s1505_s27, 0 }
  0x44   : > { %p1827_p3 = scmp.eq.s32.totalorder %s1577_s28, 1  ;;  %p1298_p7 = scmp.lt.s32.totalorder %s1505_s27, 2 }
  0x45   : > { %s1682_s17 = scalar_select %p29_p6, %s1501_s26, %s31_s12  }
  0x46   : > { %p1676_p5 = por %p1827_p3, %p38_p13  ;;  %p40_p9 = por %p39_p10, %p38_p13 }
  0x47   : > { %s260_s18 = sand.u32 1, %s1501_s26   ;;  %s1267_s14 = smul.u32 768, %s1505_s27 }
  0x48   : > { %s1828_s16 = scalar_select %p1676_p5, 1, 0 }
  0x49   : > { %s1266_s19 = smul.u32 48, %s260_s18  ;;  %p1686_p11 = pnand %p1298_p7, %p40_p9 }
  0x4a   : > { %s1693_s21 = scalar_lea.hbm %s1810_s0, %s1267_s14  ;;  %s261_s10 = scalar_lea.sflag [#allocation3], %s260_s18 }
  0x4b   : > { %s264_s11 = scalar_lea.vmem [#allocation2], %s1266_s19  ;;  %s1405_s12 = scalar_lea.hbm %s1693_s21, 768 }
  0x4c   : > { %s272_s22 = sshll.u32 %s264_s11, 4  ;;  %p1406_p12 = scmp.ne.s32.totalorder %s1693_s21, %s1405_s12  ;;  %s1695_s22 = int_to_ptr.vmem [resolvable:$true] %s272_s22 }
  0x4d   : > { %p1407_p0 = pneg %p1686_p11  ;;  %s1410_s29 = scalar_lea.hbm %s1810_s0, 1536 }
  0x4e   : > { %p1411_p13 = scmp.lt.u32.totalorder %s1693_s21, %s1810_s0  ;;  %p1412_p6 = scmp.lt.u32.totalorder %s1410_s29, %s1405_s12 }
  0x4f   : > { %p1408_p2 = pnand %p1407_p0, %p1406_p12  ;;  %p1414_p3 = scmp.lt.u32.totalorder %s1405_s12, %s1693_s21 }
  0x50   : > { %p1413_p10 = por %p1412_p6, %p1411_p13 }
  0x51   : > { %p1409_p1 = pneg %p1408_p2 }
  0x52   : > { %p1415_p7 = por %p1414_p3, %p1413_p10 }
  0x54   : > { %p1416_p9 = pnand %p1415_p7, %p1409_p1 }
  0x56   : > { %1419 = shalt.err (!%p1416_p9)
}
  0x57   : > { %s1420_s18 = scalar_lea.vmem %s1695_s22, 768  ;;  %s1511_s19 = smov [#allocation2]  }
  0x58   : > { %p1421_p12 = scmp.ne.s32.totalorder %s1695_s22, %s1420_s18  ;;  %s1425_s11 = sshll.u32 %s1511_s19, 4  ;;  %s1426_s11 = int_to_ptr.vmem [resolvable:$false] %s1425_s11 }
  0x59   : > { %s1427_s2 = scalar_lea.vmem %s1426_s11, 1536  ;;  %p1428_p4 = scmp.lt.s32.totalorder %s1695_s22, %s1426_s11 }
  0x5a   : > { %p1423_p2 = pnand %p1421_p12, %p1407_p0  ;;  %p1429_p13 = scmp.lt.s32.totalorder %s1427_s2, %s1420_s18 }
  0x5c   : > { %p1424_p5 = pneg %p1423_p2  ;;  %p1430_p6 = por %p1429_p13, %p1428_p4 }
  0x5e   : > { %p1431_p10 = pnand %p1430_p6, %p1424_p5 }
  0x60   : > { %1434 = shalt.err (!%p1431_p10)
}
  0x61   : > { %1291 = dma.hbm_to_vmem [thread:$0]  (!%p1686_p11), %s1693_s21, 768, %s1695_s22, %s261_s10  }
  0x62   : > { %288 = sbr.rel (%p1596_p8) target bundleno = 1247 (0x4df), region = 48  ;;  %s1725_s12 = sand.u32 (!%p1596_p8), 1, %s1497_s25  }
  0x63   : > { %s1268_s15 = smul.u32 (!%p1596_p8), 48, %s1725_s12  ;;  %s291_s14 = scalar_lea.sflag (!%p1596_p8), [#allocation3], %s1725_s12 }
  0x64   : > { %p1830_p4 = scmp.ne.s32.totalorder (!%p1596_p8), %s1822_s30, 0 }
  0x65   : > { %s1729_s29 = scalar_lea.vmem (!%p1596_p8), [#allocation2], %s1268_s15 }
  0x69   : > { %1480 = dma.done.wait (%p1830_p4), %s291_s14, 768  }
  0x6a   : > { %1482 = vsyncadd (%p1830_p4), %s291_s14, 4294966528  ;;  %p1831_p5 = scmp.eq.s32.totalorder %s1577_s28, 0 }
  0x6c   : > { %1484 = dma.done.wait (%p1831_p5), [#allocation6], 14336   ;;  %p1832_p8 = pmov %p1831_p5 }
  0x6d   : > { %v363_v0 = vld [vmem:[#allocation5 + $0x80] sm:$0xff]  ;;  %v364_v1 = vld [vmem:[#allocation5 + $0x88] sm:$0xff]  ;;  %v365_v11 = vld [vmem:[#allocation5 + $0x90] sm:$0xff]  ;;  %p337_p11 = scmp.lt.s32.totalorder %s1577_s28, 1  ;;  %vm1513_vm0 = vmmov 0   ;;  %vm687_vm1 = vcmask 64512  }
  0x6e   : > { %1486 = vsyncadd (%p1832_p8), [#allocation6], 4294952960  ;;  %v347_v2 = vld [vmem:[#allocation5] sm:$0xff]  ;;  %v1146_v3 = vpack.c.bf16 %v364_v1, %v363_v0  ;;  %v348_v4 = vld [vmem:[#allocation5 + $0x8] sm:$0xff]  ;;  %s973_s15 = sshll.u32 %s1725_s12, 3  ;;  %s979_s14 = sshll.u32 %s1577_s28, 7 }
  0x6f   : > { %v395_v5 = vld [vmem:[#allocation5 + $0x180] sm:$0xff]  ;;  %v396_v6 = vld [vmem:[#allocation5 + $0x188] sm:$0xff]  ;;  %v1148_v7 = vpack.c.bf16 %v348_v4, %v347_v2  ;;  %v366_v13 = vld [vmem:[#allocation5 + $0x98] sm:$0xff]  ;;  %s338_s22 = scalar_select %p337_p11, %s1577_s28, 1 }
  0x70   : > { %v1178_v8 = vpack.c.bf16 %v396_v6, %v395_v5  ;;  %v379_v9 = vld [vmem:[#allocation5 + $0x100] sm:$0xff]  ;;  %v380_v10 = vld [vmem:[#allocation5 + $0x108] sm:$0xff]  ;;  %1147 = vmatprep.subr.bf16.mxu0 %v1146_v3  ;;  %v349_v14 = vld [vmem:[#allocation5 + $0x10] sm:$0xff]  ;;  %v1150_v16 = vpack.c.bf16 %v366_v13, %v365_v11  ;;  %s1766_s21 = scalar_lea.hbm %s1817_s7, %s979_s14  ;;  %p1833_p1 = scmp.ne.s32.totalorder %s1828_s16, 0 }
  0x71   : > { %v1180_v12 = vpack.c.bf16 %v380_v10, %v379_v9  ;;  %v350_v15 = vld [vmem:[#allocation5 + $0x18] sm:$0xff]  ;;  %1149 = vmatpush3.bf16.msra.mxu0 %v1148_v7  ;;  %v397_v18 = vld [vmem:[#allocation5 + $0x190] sm:$0xff]  ;;  %v367_v23 = vld [vmem:[#allocation5 + $0xa0] sm:$0xff]  ;;  %s974_s10 = sshll.u32 %s338_s22, 3  ;;  %s850_s22 = scalar_lea.sflag [#allocation4], %s1725_s12 }
  0x72   : > { %1179 = vmatprep.subr.bf16.mxu1 %v1178_v8  ;;  %v1152_v17 = vpack.c.bf16 %v350_v15, %v349_v14  ;;  %v398_v19 = vld [vmem:[#allocation5 + $0x198] sm:$0xff]  ;;  %v381_v20 = vld [vmem:[#allocation5 + $0x110] sm:$0xff]  ;;  %v368_v24 = vld [vmem:[#allocation5 + $0xa8] sm:$0xff]  ;;  %1151 = vmatprep.subr.bf16.mxu0 %v1150_v16  ;;  %s340_s19 = scalar_lea.vmem %s1811_s1, %s974_s10  ;;  %s1515_s28 = smov [#allocation8]  }
  0x73   : > { %1181 = vmatpush3.bf16.msra.mxu1 %v1180_v12  ;;  %v1182_v21 = vpack.c.bf16 %v398_v19, %v397_v18  ;;  %v382_v22 = vld [vmem:[#allocation5 + $0x118] sm:$0xff]  ;;  %v1154_v26 = vpack.c.bf16 %v368_v24, %v367_v23  ;;  %v351_v27 = vld [vmem:[#allocation5 + $0x20] sm:$0xff]  ;;  %v352_v28 = vld [vmem:[#allocation5 + $0x28] sm:$0xff]  ;;  %s1439_s20 = sshll.u32 %s1515_s28, 4  ;;  %s1440_s20 = int_to_ptr.vmem [resolvable:$false] %s1439_s20 }
  0x74   : > { %v1184_v25 = vpack.c.bf16 %v382_v22, %v381_v20  ;;  %v399_v29 = vld [vmem:[#allocation5 + $0x1a0] sm:$0xff]  ;;  %v400_v30 = vld [vmem:[#allocation5 + $0x1a8] sm:$0xff]  ;;  %v1156_v33 = vpack.c.bf16 %v352_v28, %v351_v27  ;;  %v369_v35 = vld [vmem:[#allocation5 + $0xb0] sm:$0xff]  ;;  %s1441_s18 = scalar_lea.vmem %s1440_s20, 256 }
  0x75   : > { %1183 = vmatprep.subr.bf16.mxu1 %v1182_v21  ;;  %v383_v31 = vld [vmem:[#allocation5 + $0x120] sm:$0xff]  ;;  %v384_v32 = vld [vmem:[#allocation5 + $0x128] sm:$0xff]  ;;  %1153 = vmatpush3.bf16.msra.mxu0 %v1152_v17  ;;  %v1186_v34 = vpack.c.bf16 %v400_v30, %v399_v29  ;;  %v370_v36 = vld [vmem:[#allocation5 + $0xb8] sm:$0xff] }
  0x76   : > { %v353_v37 = vld [vmem:[#allocation5 + $0x30] sm:$0xff]  ;;  %1155 = vmatprep.subr.bf16.mxu0 %v1154_v26  ;;  %v1188_v38 = vpack.c.bf16 %v384_v32, %v383_v31  ;;  %v1158_v39 = vpack.c.bf16 %v370_v36, %v369_v35  ;;  %v354_v40 = vld [vmem:[#allocation5 + $0x38] sm:$0xff]  ;;  %v371_v46 = vld [vmem:[#allocation5 + $0xc0] sm:$0xff] }
  0x77   : > { %1185 = vmatpush3.bf16.msra.mxu1 %v1184_v25  ;;  %v401_v41 = vld [vmem:[#allocation5 + $0x1b0] sm:$0xff]  ;;  %v402_v42 = vld [vmem:[#allocation5 + $0x1b8] sm:$0xff]  ;;  %v372_v47 = vld [vmem:[#allocation5 + $0xc8] sm:$0xff]  ;;  %v1160_v48 = vpack.c.bf16 %v354_v40, %v353_v37 }
  0x78   : > { %1187 = vmatprep.subr.bf16.mxu1 %v1186_v34  ;;  %v1190_v43 = vpack.c.bf16 %v402_v42, %v401_v41  ;;  %v385_v44 = vld [vmem:[#allocation5 + $0x130] sm:$0xff]  ;;  %v386_v45 = vld [vmem:[#allocation5 + $0x138] sm:$0xff]  ;;  %v403_v49 = vld [vmem:[#allocation5 + $0x1c0] sm:$0xff]  ;;  %v1162_v52 = vpack.c.bf16 %v372_v47, %v371_v46 }
  0x79   : > { %1157 = vmatpush3.bf16.msra.mxu0 %v1156_v33  ;;  %v404_v50 = vld [vmem:[#allocation5 + $0x1c8] sm:$0xff]  ;;  %v1192_v51 = vpack.c.bf16 %v386_v45, %v385_v44  ;;  %v355_v53 = vld [vmem:[#allocation5 + $0x40] sm:$0xff]  ;;  %v373_v58 = vld [vmem:[#allocation5 + $0xd0] sm:$0xff] }
  0x7a   : > { %1159 = vmatprep.subr.bf16.mxu0 %v1158_v39  ;;  %v356_v54 = vld [vmem:[#allocation5 + $0x48] sm:$0xff]  ;;  %v387_v55 = vld [vmem:[#allocation5 + $0x140] sm:$0xff]  ;;  %v1194_v56 = vpack.c.bf16 %v404_v50, %v403_v49  ;;  %v374_v59 = vld [vmem:[#allocation5 + $0xd8] sm:$0xff] }
  0x7b   : > { %1189 = vmatpush3.bf16.msra.mxu1 %v1188_v38  ;;  %v388_v57 = vld [vmem:[#allocation5 + $0x148] sm:$0xff]  ;;  %v405_v60 = vld [vmem:[#allocation5 + $0x1d0] sm:$0xff]  ;;  %v406_v61 = vld [vmem:[#allocation5 + $0x1d8] sm:$0xff]  ;;  %v1164_v62 = vpack.c.bf16 %v356_v54, %v355_v53  ;;  %v1166_v0 = vpack.c.bf16 %v374_v59, %v373_v58 }
  0x7c   : > { %1191 = vmatprep.subr.bf16.mxu1 %v1190_v43  ;;  %v1196_v63 = vpack.c.bf16 %v388_v57, %v387_v55  ;;  %v357_v1 = vld [vmem:[#allocation5 + $0x50] sm:$0xff]  ;;  %v358_v2 = vld [vmem:[#allocation5 + $0x58] sm:$0xff]  ;;  %v1198_v4 = vpack.c.bf16 %v406_v61, %v405_v60  ;;  %v375_v6 = vld [vmem:[#allocation5 + $0xe0] sm:$0xff] }
  0x7d   : > { %1161 = vmatpush3.bf16.msra.mxu0 %v1160_v48  ;;  %v389_v3 = vld [vmem:[#allocation5 + $0x150] sm:$0xff]  ;;  %v390_v5 = vld [vmem:[#allocation5 + $0x158] sm:$0xff]  ;;  %v376_v7 = vld [vmem:[#allocation5 + $0xe8] sm:$0xff]  ;;  %v1168_v10 = vpack.c.bf16 %v358_v2, %v357_v1 }
  0x7e   : > { %1163 = vmatprep.subr.bf16.mxu0 %v1162_v52  ;;  %v407_v8 = vld [vmem:[#allocation5 + $0x1e0] sm:$0xff]  ;;  %v408_v9 = vld [vmem:[#allocation5 + $0x1e8] sm:$0xff]  ;;  %v1200_v13 = vpack.c.bf16 %v390_v5, %v389_v3  ;;  %v1170_v14 = vpack.c.bf16 %v376_v7, %v375_v6  ;;  %v377_v19 = vld [vmem:[#allocation5 + $0xf0] sm:$0xff] }
  0x7f   : > { %1193 = vmatpush3.bf16.msra.mxu1 %v1192_v51  ;;  %v359_v11 = vld [vmem:[#allocation5 + $0x60] sm:$0xff]  ;;  %v342_v12 = vld [vmem:[%s1729_s29 + $0x8] sm:$0xff]  ;;  %v1202_v18 = vpack.c.bf16 %v408_v9, %v407_v8  ;;  %v344_v21 = vld [vmem:[%s1729_s29 + $0x18] sm:$0xff] }
  0x80   : > { %1195 = vmatprep.subr.bf16.mxu1 %v1194_v56  ;;  %v360_v15 = vld [vmem:[#allocation5 + $0x68] sm:$0xff]  ;;  %v391_v16 = vld [vmem:[#allocation5 + $0x160] sm:$0xff]  ;;  %v378_v20 = vld [vmem:[#allocation5 + $0xf8] sm:$0xff]  ;;  %514 = vmatprep.mubr.f32.mxu0 %v342_v12 }
  0x81   : > { %1165 = vmatpush3.bf16.msra.mxu0 %v1164_v62  ;;  %v392_v17 = vld [vmem:[#allocation5 + $0x168] sm:$0xff]  ;;  %v409_v22 = vld [vmem:[#allocation5 + $0x1f0] sm:$0xff]  ;;  %v410_v23 = vld [vmem:[#allocation5 + $0x1f8] sm:$0xff]  ;;  %584 = vmatprep.mubr.f32.mxu1 %v344_v21  ;;  %v1172_v24 = vpack.c.bf16 %v360_v15, %v359_v11  ;;  %v1174_v26 = vpack.c.bf16 %v378_v20, %v377_v19 }
  0x82   : > { %1167 = vmatprep.subr.bf16.mxu0 %v1166_v0  ;;  %v1204_v25 = vpack.c.bf16 %v392_v17, %v391_v16  ;;  %v361_v27 = vld [vmem:[#allocation5 + $0x70] sm:$0xff]  ;;  %v362_v28 = vld [vmem:[#allocation5 + $0x78] sm:$0xff]  ;;  %v1206_v30 = vpack.c.bf16 %v410_v23, %v409_v22  ;;  %v427_v32 = vld [vmem:[#allocation5 + $0x280] sm:$0xff] }
  0x83   : > { %1197 = vmatpush3.bf16.msra.mxu1 %v1196_v63  ;;  %v393_v29 = vld [vmem:[#allocation5 + $0x170] sm:$0xff]  ;;  %v394_v31 = vld [vmem:[#allocation5 + $0x178] sm:$0xff]  ;;  %v428_v33 = vld [vmem:[#allocation5 + $0x288] sm:$0xff]  ;;  %v1176_v34 = vpack.c.bf16 %v362_v28, %v361_v27 }
  0x84   : > { %1199 = vmatprep.subr.bf16.mxu1 %v1198_v4  ;;  %v1208_v35 = vpack.c.bf16 %v394_v31, %v393_v29  ;;  %v1210_v36 = vpack.c.bf16 %v428_v33, %v427_v32  ;;  %v411_v37 = vld [vmem:[#allocation5 + $0x200] sm:$0xff]  ;;  %v412_v38 = vld [vmem:[#allocation5 + $0x208] sm:$0xff]  ;;  %v429_v39 = vld [vmem:[#allocation5 + $0x290] sm:$0xff] }
  0x85   : > { %1169 = vmatpush3.bf16.msra.mxu0 %v1168_v10  ;;  %v430_v40 = vld [vmem:[#allocation5 + $0x298] sm:$0xff]  ;;  %v341_v41 = vld [vmem:[%s1729_s29] sm:$0xff]  ;;  %v1212_v42 = vpack.c.bf16 %v412_v38, %v411_v37  ;;  %v343_v43 = vld [vmem:[%s1729_s29 + $0x10] sm:$0xff] }
  0x86   : > { %1171 = vmatprep.subr.bf16.mxu0 %v1170_v14  ;;  %v1214_v44 = vpack.c.bf16 %v430_v40, %v429_v39  ;;  %v413_v45 = vld [vmem:[#allocation5 + $0x210] sm:$0xff]  ;;  %v414_v46 = vld [vmem:[#allocation5 + $0x218] sm:$0xff]  ;;  %v431_v47 = vld [vmem:[#allocation5 + $0x2a0] sm:$0xff]  ;;  %v1514_v39 = vmov 0.0|0.0  }
  0x87   : > { %1201 = vmatpush3.bf16.msra.mxu1 %v1200_v13  ;;  %v432_v48 = vld [vmem:[#allocation5 + $0x2a8] sm:$0xff]  ;;  %v1216_v50 = vpack.c.bf16 %v414_v46, %v413_v45  ;;  %v415_v52 = vld [vmem:[#allocation5 + $0x220] sm:$0xff]  ;;  %v433_v54 = vld [vmem:[#allocation5 + $0x2b0] sm:$0xff] }
  0x88   : > { %1203 = vmatprep.subr.bf16.mxu1 %v1202_v18  ;;  %v346_v49 = vld [vmem:[%s1729_s29 + $0x28] sm:$0xff]  ;;  %v1218_v51 = vpack.c.bf16 %v432_v48, %v431_v47  ;;  %v417_v58 = vld [vmem:[#allocation5 + $0x230] sm:$0xff]  ;;  %v435_v60 = vld [vmem:[#allocation5 + $0x2c0] sm:$0xff] }
  0x89   : > { %1173 = vmatpush3.bf16.msra.mxu0 %v1172_v24  ;;  %v416_v53 = vld [vmem:[#allocation5 + $0x228] sm:$0xff]  ;;  %v434_v55 = vld [vmem:[#allocation5 + $0x2b8] sm:$0xff]  ;;  %v419_v0 = vld [vmem:[#allocation5 + $0x240] sm:$0xff] }
  0x8a   : > { %1175 = vmatprep.subr.bf16.mxu0 %v1174_v26  ;;  %v1220_v56 = vpack.c.bf16 %v416_v53, %v415_v52  ;;  %v1222_v57 = vpack.c.bf16 %v434_v55, %v433_v54  ;;  %v418_v59 = vld [vmem:[#allocation5 + $0x238] sm:$0xff]  ;;  %v436_v61 = vld [vmem:[#allocation5 + $0x2c8] sm:$0xff]  ;;  %v437_v2 = vld [vmem:[#allocation5 + $0x2d0] sm:$0xff] }
  0x8b   : > { %1205 = vmatpush3.bf16.msra.mxu1 %v1204_v25  ;;  %v1224_v62 = vpack.c.bf16 %v418_v59, %v417_v58  ;;  %v1226_v63 = vpack.c.bf16 %v436_v61, %v435_v60  ;;  %v420_v1 = vld [vmem:[#allocation5 + $0x248] sm:$0xff]  ;;  %v438_v3 = vld [vmem:[#allocation5 + $0x2d8] sm:$0xff]  ;;  %v421_v6 = vld [vmem:[#allocation5 + $0x250] sm:$0xff] }
  0x8c   : > { %1207 = vmatprep.subr.bf16.mxu1 %v1206_v30  ;;  %v1228_v4 = vpack.c.bf16 %v420_v1, %v419_v0  ;;  %v1230_v5 = vpack.c.bf16 %v438_v3, %v437_v2  ;;  %v422_v7 = vld [vmem:[#allocation5 + $0x258] sm:$0xff]  ;;  %v439_v8 = vld [vmem:[#allocation5 + $0x2e0] sm:$0xff]  ;;  %v440_v9 = vld [vmem:[#allocation5 + $0x2e8] sm:$0xff] }
  0x8d   : > { %1177 = vmatpush3.bf16.msra.mxu0 %v1176_v34  ;;  %v1232_v10 = vpack.c.bf16 %v422_v7, %v421_v6  ;;  %v1234_v11 = vpack.c.bf16 %v440_v9, %v439_v8  ;;  %v423_v12 = vld [vmem:[#allocation5 + $0x260] sm:$0xff]  ;;  %v424_v13 = vld [vmem:[#allocation5 + $0x268] sm:$0xff]  ;;  %v441_v14 = vld [vmem:[#allocation5 + $0x2f0] sm:$0xff] }
  0x8e   : > { %1211 = vmatprep.subr.bf16.mxu0 %v1210_v36  ;;  %v442_v15 = vld [vmem:[#allocation5 + $0x2f8] sm:$0xff]  ;;  %v1236_v16 = vpack.c.bf16 %v424_v13, %v423_v12  ;;  %v425_v18 = vld [vmem:[#allocation5 + $0x270] sm:$0xff]  ;;  %v975_v23 = vld [vmem:[%s1813_s3] ss:$0 sm:$0xff]  ;;  %v1512_v36 = vmov 0.0  }
  0x8f   : > { %1209 = vmatpush3.bf16.msra.mxu1 %v1208_v35  ;;  %v1238_v17 = vpack.c.bf16 %v442_v15, %v441_v14  ;;  %v426_v19 = vld [vmem:[#allocation5 + $0x278] sm:$0xff]  ;;  %v345_v21 = vld [vmem:[%s1729_s29 + $0x20] sm:$0xff]  ;;  %v670_v38 = vld [vmem:[#allocation7 + $0x8] sm:$0xff]  ;;  %s336_s29 = scalar_lea.vmem [#allocation8], %s973_s15 }
  0x90   : > { %515 = vmatmul.mubr.f32.vlgmr.msra.gmra.mrb[0].mxu0 %v341_v41  ;;  %v1240_v20 = vpack.c.bf16 %v426_v19, %v425_v18  ;;  %v686_v35 = vld [vmem:[%s1815_s5] sm:$0xff]  ;;  %1106 = vmatprep.subr.mxu1 %v1512_v36  ;;  %v671_v41 = vld [vmem:[#allocation7 + $0x10] sm:$0xff]  ;;  %v674_v46 = vld [vmem:[#allocation7 + $0x28] sm:$0xff]  ;;  %s863_s30 = sshll.u32 %s336_s29, 4  ;;  %s1768_s30 = int_to_ptr.vmem [resolvable:$true] %s863_s30 }
  0x91   : > { %1213 = vmatpush3.bf16.msra.mxu0 %v1212_v42  ;;  %654 = vmatprep.mubr.f32.mxu0 %v346_v49  ;;  %v669_v37 = vld [vmem:[#allocation7] sm:$0xff]  ;;  %v672_v42 = vld [vmem:[#allocation7 + $0x18] sm:$0xff]  ;;  %v675_v48 = vld [vmem:[#allocation7 + $0x30] sm:$0xff]  ;;  %s1435_s10 = scalar_lea.vmem %s1768_s30, 128  ;;  %p1442_p9 = scmp.lt.s32.totalorder %s1768_s30, %s1440_s20 }
  0x92   : > { %585 = vmatmul.mubr.f32.vlgmr.msra.gmra.mrb[0].mxu1 %v343_v43  ;;  %1215 = vmatprep.subr.bf16.mxu0 %v1214_v44  ;;  %v1243_v40 = vpack.c.bf16 %v670_v38, %v669_v37  ;;  %v685_v43 = vld [vmem:[%s340_s19] sm:$0xff]  ;;  %v1246_v44 = vpack.c.bf16 %v672_v42, %v671_v41  ;;  %v676_v49 = vld [vmem:[#allocation7 + $0x38] sm:$0xff]  ;;  %v678_v52 = vld [vmem:[#allocation7 + $0x48] sm:$0xff]  ;;  %p1436_p0 = scmp.ne.s32.totalorder %s1768_s30, %s1435_s10  ;;  %p1443_p12 = scmp.lt.s32.totalorder %s1441_s18, %s1435_s10 }
  0x93   : > { %1108 = vmatprep.mubr.msk.f32.mxu1 %vm1513_vm0, %v1512_v36  ;;  %1107 = vmatpush3.msra.mxu1 %v686_v35  ;;  %v673_v45 = vld [vmem:[#allocation7 + $0x20] sm:$0xff]  ;;  %v679_v58 = vld [vmem:[#allocation7 + $0x50] sm:$0xff]  ;;  %v680_v59 = vld [vmem:[#allocation7 + $0x58] sm:$0xff] }
  0x94   : > { %1242 = vmatprep.subr.bf16.mxu1 %v1514_v39  ;;  %v1249_v47 = vpack.c.bf16 %v674_v46, %v673_v45  ;;  %v1258_v60 = vpack.c.bf16 %v680_v59, %v679_v58  ;;  %v681_v61 = vld [vmem:[#allocation7 + $0x60] sm:$0xff]  ;;  %v683_v0 = vld [vmem:[#allocation7 + $0x70] sm:$0xff]  ;;  %v684_v1 = vld [vmem:[#allocation7 + $0x78] sm:$0xff]  ;;  %p1437_p3 = pnand %p1436_p0, %p1833_p1  ;;  %p1444_p2 = por %p1443_p12, %p1442_p9 }
  0x95   : > { %1217 = vmatpush3.bf16.msra.mxu0 %v1216_v50  ;;  %v1252_v50 = vpack.c.bf16 %v676_v49, %v675_v48  ;;  %v1264_v2 = vpack.c.bf16 %v684_v1, %v683_v0  ;;  %v977_v9 = vld [vmem:[%s1816_s6] ss:$0 sm:$0xff] }
  0x96   : > { %1219 = vmatprep.subr.bf16.mxu0 %v1218_v51  ;;  %1109 = vmatmul.mubr.msk.f32.vlgmr.msra.gmra.mrb[2].mxu1 %vm687_vm1, %v685_v43  ;;  %v677_v51 = vld [vmem:[#allocation7 + $0x40] sm:$0xff]  ;;  %p1438_p7 = pneg %p1437_p3 }
  0x97   : > { %1244 = vmatpush3.bf16.msra.mxu1 %v1243_v40  ;;  %1143 = vmatprep.mubr.msk.f32.mxu1 %vm1513_vm0, %v1512_v36  ;;  %v1255_v53 = vpack.c.bf16 %v678_v52, %v677_v51 }
  0x98   : > { %1245 = vmatprep.subr.bf16.mxu1 %v1514_v39  ;;  %p1445_p13 = pnand %p1444_p2, %p1438_p7 }
  0x99   : > { %1221 = vmatpush3.bf16.msra.mxu0 %v1220_v56 }
  0x9a   : > { %1223 = vmatprep.subr.bf16.mxu0 %v1222_v57 }
  0x9b   : > { %1247 = vmatpush3.bf16.msra.mxu1 %v1246_v44 }
  0x9c   : > { %1248 = vmatprep.subr.bf16.mxu1 %v1514_v39 }
  0x9d   : > { %1225 = vmatpush3.bf16.msra.mxu0 %v1224_v62  ;;  %v682_v62 = vld [vmem:[#allocation7 + $0x68] sm:$0xff] }
  0x9e   : > { %1227 = vmatprep.subr.bf16.mxu0 %v1226_v63  ;;  %v1261_v63 = vpack.c.bf16 %v682_v62, %v681_v61 }
  0x9f   : > { %1250 = vmatpush3.bf16.msra.mxu1 %v1249_v47 }
  0xa0   : > { %1251 = vmatprep.subr.bf16.mxu1 %v1514_v39 }
  0xa1   : > { %1229 = vmatpush3.bf16.msra.mxu0 %v1228_v4 }
  0xa2   : > { %1231 = vmatprep.subr.bf16.mxu0 %v1230_v5 }
  0xa3   : > { %1253 = vmatpush3.bf16.msra.mxu1 %v1252_v50 }
  0xa4   : > { %1254 = vmatprep.subr.bf16.mxu1 %v1514_v39 }
  0xa5   : > { %1233 = vmatpush3.bf16.msra.mxu0 %v1232_v10 }
  0xa6   : > { %1235 = vmatprep.subr.bf16.mxu0 %v1234_v11 }
  0xa7   : > { %1256 = vmatpush3.bf16.msra.mxu1 %v1255_v53 }
  0xa8   : > { %1257 = vmatprep.subr.bf16.mxu1 %v1514_v39 }
  0xa9   : > { %1237 = vmatpush3.bf16.msra.mxu0 %v1236_v16 }
  0xaa   : > { %1239 = vmatprep.subr.bf16.mxu0 %v1238_v17 }
  0xab   : > { %1259 = vmatpush3.bf16.msra.mxu1 %v1258_v60 }
  0xac   : > { %1260 = vmatprep.subr.bf16.mxu1 %v1514_v39 }
  0xad   : > { %1241 = vmatpush3.bf16.msra.mxu0 %v1240_v20 }
  0xaf   : > { %1262 = vmatpush3.bf16.msra.mxu1 %v1261_v63 }
  0xb0   : > { %655 = vmatmul.mubr.f32.vlgmr.msra.gmra.mrb[2].mxu0 %v345_v21  ;;  %1263 = vmatprep.subr.bf16.mxu1 %v1514_v39 }
  0xb3   : > { %1265 = vmatpush3.bf16.msra.mxu1 %v1264_v2 }
 0x163   : > { %v1014_v22 = vpop.f32.mrb[0].mxu0 }
 0x164   : > { %v1015_v24 = vpop.f32.mrb[1].mxu0 }
 0x165   : > { %v1049_v25 = vpop.f32.mrb[0].mxu1  ;;  %v1016_v26 = vadd.f32 %v1015_v24, %v1014_v22 }
 0x166   : > { %v1050_v27 = vpop.f32.mrb[1].mxu1 }
 0x167   : > { %v1051_v28 = vadd.f32 %v1050_v27, %v1049_v25  ;;  %v517_v29 = vadd.f32 %v1016_v26, %v975_v23 }
 0x169   : > { %v587_v30 = vadd.f32 %v1051_v28, %v517_v29  ;;  %v757_v3 = vpop.f32.mrb[2].mxu1 }
 0x16a   : > { %v1110_v4 = vpop.f32.mrb[3].mxu1 }
 0x183   : > { %v1084_v31 = vpop.f32.mrb[2].mxu0 }
 0x184   : > { %v1085_v32 = vpop.f32.mrb[3].mxu0 }
 0x185   : > { %v1086_v33 = vadd.f32 %v1085_v32, %v1084_v31 }
 0x187   : > { %v657_v34 = vadd.f32 %v1086_v33, %v587_v30 }
 0x189   : > { %660 = vmax.xlane.f32.xlu0 %v657_v34 }
 0x216   : > { %v661_v54 = vpop.xlane.xlu0 %660 }
 0x217   : > { %v662_v55 = vsub.f32 %v657_v34, %v661_v54 }
 0x219   : > { %v663_v56 = vmul.f32 1.442695, %v662_v55 }
 0x21b   : > { %1341 = vpow2.f32 %v663_v56 }
 0x225   : > { %v1342_v57 = vpop.eup %1341 }
 0x226   : > { %665 = vadd.xlane.f32.xlu0 %v1342_v57 }
 0x2b3   : > { %v666_v5 = vpop.xlane.xlu0 %665 }
 0x2b4   : > { %1343 = vrcp.f32 %v666_v5 }
 0x2be   : > { %v1344_v6 = vpop.eup %1343 }
 0x2bf   : > { %v668_v7 = vmul.f32 %v1344_v6, %v1342_v57 }
 0x2c1   : > { %1144 = vmatmul.mubr.f32.vlgmr.msra.gmra.mrb[4].mxu1 %v668_v7 }
 0x394   : > { %v827_v8 = vpop.f32.mrb[4].mxu1 }
 0x395   : > { %v828_v10 = vadd.f32 %v827_v8, %v757_v3  ;;  %v1145_v11 = vpop.f32.mrb[5].mxu1 }
 0x397   : > { %v838_v12 = vadd.f32 %v977_v9, %v828_v10 }
 0x399   : > { %839 = vmax.xlane.f32.xlu1 %v838_v12 }
 0x426   : > { %v840_v13 = vpop.xlane.xlu1 %839 }
 0x427   : > { %v841_v14 = vsub.f32 %v838_v12, %v840_v13 }
 0x429   : > { %v842_v15 = vmul.f32 1.442695, %v841_v14 }
 0x42b   : > { %1345 = vpow2.f32 %v842_v15 }
 0x435   : > { %v1346_v16 = vpop.eup %1345 }
 0x436   : > { %844 = vadd.xlane.f32.xlu1 %v1346_v16 }
 0x4c3   : > { %v845_v17 = vpop.xlane.xlu1 %844 }
 0x4c4   : > { %1347 = vrcp.f32 %v845_v17 }
 0x4ce   : > { %v1348_v18 = vpop.eup %1347 }
 0x4cf   : > { %v847_v19 = vmul.f32 %v1348_v18, %v1346_v16 }
 0x4d1   : > { %848 = vst [vmem:[%s336_s29] sm:$0xff] %v847_v19 }
 0x4d2   : > { %1448 = shalt.err (!%p1445_p13)
}
 0x4d3   : > { %s1449_s12 = scalar_lea.hbm %s1766_s21, 128  ;;  %s1453_s2 = scalar_lea.hbm %s1817_s7, 256 }
 0x4d4   : > { %p1450_p6 = scmp.ne.s32.totalorder %s1766_s21, %s1449_s12  ;;  %p1454_p5 = scmp.lt.u32.totalorder %s1766_s21, %s1817_s7 }
 0x4d5   : > { %p1455_p8 = scmp.lt.u32.totalorder %s1453_s2, %s1449_s12  ;;  %p1457_p0 = scmp.lt.u32.totalorder %s1449_s12, %s1766_s21 }
 0x4d6   : > { %p1451_p10 = pnand %p1450_p6, %p1833_p1 }
 0x4d7   : > { %p1456_p11 = por %p1455_p8, %p1454_p5 }
 0x4d8   : > { %p1452_p4 = pneg %p1451_p10 }
 0x4d9   : > { %p1458_p3 = por %p1457_p0, %p1456_p11 }
 0x4db   : > { %p1459_p7 = pnand %p1458_p3, %p1452_p4 }
 0x4dd   : > { %1462 = shalt.err (!%p1459_p7)
}
 0x4de   : > { %1279 = dma.vmem_to_hbm [thread:$0]  (%p1833_p1), %s1768_s30, 128, %s1766_s21, %s850_s22  }
 0x4df PF: > { %s875_s29 = sand.u32 1, %s1493_s24   ;;  %p1834_p9 = scmp.ne.s32.totalorder %s1823_s8, 0 }
 0x4e0   : > { %p1835_p12 = scmp.ge.s32.totalorder %s1505_s27, 2  ;;  %s876_s9 = scalar_lea.sflag [#allocation4], %s875_s29 }
 0x4e2   : > { %p1293_p2 = pnand %p1835_p12, %p1834_p9 }
 0x4e4   : > { %1488 = dma.done.wait (!%p1293_p2), %s876_s9, 128  }
 0x4e5   : > { %1490 = vsyncadd (!%p1293_p2), %s876_s9, 4294967168  ;;  %p21_p13 = scmp.ge.s32.totalorder %s1666_s13, 4   ;;  %s1836_s24 = smov %s1497_s25 }
 0x4e6   : > { %s1837_s25 = smov %s1501_s26  ;;  %s1838_s26 = smov %s1682_s17 }
 0x4e7   : > { %s1839_s27 = smov %s1666_s13  ;;  %23 = sbr.rel (!%p21_p13) target bundleno = 8 (0x8), region = 104 }
 0x4ee   :  { %881 = vsyncpa [#allocation3], 1 }
 0x4ef   :  { %883 = vsyncpa [#allocation3 + $0x1], 1 }
 0x4f0   :  { %884 = vsyncpa [#allocation6], 1 }
 0x4f1   :  { %885 = vsyncpa [#allocation4], 1 }
 0x4f2   :  { %887 = vsyncpa [#allocation4 + $0x1], 1 }

</bundles_post_ra>
